<compile_context>
chip_gen: v7x
topology: tpu7x:2x2x1
jax: 0.10.0
libtpu: 0.0.40
codegen_flags: <defaults>
</compile_context>

<pallas_src>
import functools

import jax
import jax.numpy as jnp
from jax.experimental import pallas as pl
from jax.experimental.pallas import tpu as pltpu

IN_FEATURES = 512
OUT_FEATURES = 50
N_PAD = 128  # lane-dense padded width of the weight / MXU operand


def _style_classifier_kernel(x_ref, w_ref, b_ref, o_ref):
    # MXU matmul against the lane-padded [512,128] weight, bias add on VPU,
    # sigmoid on EUP.  Only the first 50 columns are stored.
    logits = jnp.dot(x_ref[...], w_ref[...],
                     preferred_element_type=jnp.float32) + b_ref[...]
    o_ref[...] = jax.nn.sigmoid(logits[:, :OUT_FEATURES]).astype(o_ref.dtype)


def _round_up(n, m):
    return ((n + m - 1) // m) * m


def _vmem_capacity_bytes():
    try:
        return int(pltpu.get_tpu_info().vmem_capacity_bytes)
    except Exception:
        return 64 << 20  # conservative (v7x-class) default


def _const_block_spec(shape):
    # Constant index_map -> block fetched once; single-buffer it to reclaim
    # VMEM.  Fall back gracefully if this JAX version lacks pipeline_mode.
    index_map = lambda i: (0,) * len(shape)
    try:
        return pl.BlockSpec(shape, index_map, pipeline_mode=pl.Buffered(1))
    except (TypeError, AttributeError):
        return pl.BlockSpec(shape, index_map)


def style_classifier_forward(x, w_p, b_p):
    """x: [B, 512] f32, w_p: [512, 128] f32 (lane-padded), b_p: [1, 128] f32.

    Returns sigmoid(x @ w + b) with shape [B, 50].
    """
    B = x.shape[0]

    vmem_cap = _vmem_capacity_bytes()
    tb_max = 2048 if vmem_cap <= (64 << 20) else 4096

    # (8,128)-aligned batch tile; cap at ceil(B/2) so we get >= 2 grid steps
    # whenever possible (megacore sharding on v7x, better pipelining overlap).
    tb = max(8, min(tb_max, _round_up(-(-B // 2), 8)))
    grid = (pl.cdiv(B, tb),)

    # VMEM budget: double-buffered x/out tiles, (single-buffered) w/b, plus
    # the implicit (tb, 128) f32 logits temp materialized before the sigmoid.
    tile_bytes = (2 * tb * IN_FEATURES * 4        # x double-buffer
                  + 2 * tb * N_PAD * 4            # out double-buffer (padded layout)
                  + tb * N_PAD * 4                # logits temp
                  + 2 * IN_FEATURES * N_PAD * 4   # w (2x in case single-buffer falls back)
                  + 2 * N_PAD * 4)                # b
    vmem_limit = int(min(max(tile_bytes + (4 << 20), 16 << 20),
                         vmem_cap * 3 // 4))

    cost = pl.CostEstimate(
        flops=2 * B * IN_FEATURES * N_PAD,
        transcendentals=B * OUT_FEATURES,
        bytes_accessed=(B * IN_FEATURES * 4          # x read
                        + B * OUT_FEATURES * 4       # out write
                        + IN_FEATURES * N_PAD * 4    # w read
                        + N_PAD * 4),                # b read
    )

    return pl.pallas_call(
        _style_classifier_kernel,
        out_shape=jax.ShapeDtypeStruct((B, OUT_FEATURES), jnp.float32),
        grid=grid,
        in_specs=[
            pl.BlockSpec((tb, IN_FEATURES), lambda i: (i, 0)),  # x tile (ragged last block OK)
            _const_block_spec((IN_FEATURES, N_PAD)),            # w, VMEM-resident
            _const_block_spec((1, N_PAD)),                      # b, VMEM-resident
        ],
        out_specs=pl.BlockSpec((tb, OUT_FEATURES), lambda i: (i, 0)),
        compiler_params=pltpu.CompilerParams(
            dimension_semantics=("parallel",),
            vmem_limit_bytes=vmem_limit,
        ),
        cost_estimate=cost,
    )(x, w_p, b_p)


def _init_params(key):
    # Deterministic init mirroring nn.Linear(512, 50) parameter shapes.
    # PyTorch stores weight as [out, in]; we keep the transposed [in, out]
    # copy for the kernel's row-major matmul, and pad 50 -> 128 lanes ONCE
    # here (not per forward call).
    k_w, k_b = jax.random.split(key)
    bound = 1.0 / jnp.sqrt(float(IN_FEATURES))
    w = jax.random.uniform(k_w, (IN_FEATURES, OUT_FEATURES), jnp.float32,
                           -bound, bound)
    b = jax.random.uniform(k_b, (OUT_FEATURES,), jnp.float32, -bound, bound)
    w_p = jnp.pad(w, ((0, 0), (0, N_PAD - OUT_FEATURES)))           # [512, 128]
    b_p = jnp.pad(b, (0, N_PAD - OUT_FEATURES)).reshape(1, N_PAD)   # [1, 128]
    return w, b, w_p, b_p


if __name__ == "__main__":
    key = jax.random.PRNGKey(0)
    k_x, k_p = jax.random.split(key)

    B = 2
    x = jax.random.normal(k_x, (B, IN_FEATURES), jnp.float32)
    w, b, w_p, b_p = _init_params(k_p)

    fwd = jax.jit(style_classifier_forward)
    out = jax.block_until_ready(fwd(x, w_p, b_p))

    # Sanity check against plain-JAX reference.
    ref = jax.nn.sigmoid(x @ w + b[None, :])
    assert out.shape == (B, OUT_FEATURES)
    assert jnp.allclose(out, ref, atol=1e-5, rtol=1e-5)

    print("KERNEL_OK")
</pallas_src>

<mosaic_0001>
module attributes {stable_mosaic.version = 11 : i64} {
  func.func @_style_classifier_kernel(%arg0: i32, %arg1: memref<8x512xf32, #tpu.memory_space<vmem>>, %arg2: memref<512x128xf32, #tpu.memory_space<vmem>>, %arg3: memref<1x128xf32, #tpu.memory_space<vmem>>, %arg4: memref<8x50xf32, #tpu.memory_space<vmem>>) attributes {dimension_semantics = [#tpu.dimension_semantics<parallel>], iteration_bounds = array<i64: 1>, scalar_prefetch = 0 : i64, scratch_operands = 0 : i64, tpu.core_type = #tpu.core_type<tc>, window_params = [{transform_indices = @transform_0, window_bounds = array<i64: 8, 512>}, {pipeline_mode = #tpu.pipeline_mode<synchronous>, transform_indices = @transform_1, window_bounds = array<i64: 512, 128>}, {pipeline_mode = #tpu.pipeline_mode<synchronous>, transform_indices = @transform_2, window_bounds = array<i64: 1, 128>}, {transform_indices = @transform_3, window_bounds = array<i64: 8, 50>}]} {
    %c0 = arith.constant 0 : index
    %c0_0 = arith.constant 0 : index
    %0 = vector.load %arg1[%c0, %c0_0] : memref<8x512xf32, #tpu.memory_space<vmem>>, vector<8x512xf32>
    %c0_1 = arith.constant 0 : index
    %c0_2 = arith.constant 0 : index
    %1 = vector.load %arg2[%c0_1, %c0_2] : memref<512x128xf32, #tpu.memory_space<vmem>>, vector<512x128xf32>
    %cst = arith.constant dense<0.000000e+00> : vector<8x128xf32>
    %2 = tpu.matmul %0, %1, %cst {dimension_numbers = #tpu.dot_dimension_numbers<[1], [0], [0], [1], [0, 0, 1, 1], [], []>} : vector<8x512xf32>, vector<512x128xf32>, vector<8x128xf32> -> vector<8x128xf32>
    %c0_3 = arith.constant 0 : index
    %c0_4 = arith.constant 0 : index
    %3 = vector.load %arg3[%c0_3, %c0_4] : memref<1x128xf32, #tpu.memory_space<vmem>>, vector<1x128xf32>
    %4 = vector.broadcast %3 : vector<1x128xf32> to vector<8x128xf32>
    %5 = arith.addf %2, %4 : vector<8x128xf32>
    %6 = vector.extract_strided_slice %5 {offsets = [0, 0], sizes = [8, 50], strides = [1, 1]} : vector<8x128xf32> to vector<8x50xf32>
    %7 = arith.negf %6 : vector<8x50xf32>
    %8 = math.exp %7 : vector<8x50xf32>
    %cst_5 = arith.constant 1.000000e+00 : f32
    %9 = vector.broadcast %cst_5 : f32 to vector<8x50xf32>
    %10 = arith.addf %9, %8 : vector<8x50xf32>
    %11 = arith.divf %9, %10 : vector<8x50xf32>
    %c0_6 = arith.constant 0 : index
    %c0_7 = arith.constant 0 : index
    %12 = vector.load %arg4[%c0_6, %c0_7] : memref<8x50xf32, #tpu.memory_space<vmem>>, vector<8x50xf32>
    tpu.vector_store %arg4[%c0_6, %c0_7], %11 {strides = array<i32>} : memref<8x50xf32, #tpu.memory_space<vmem>>, vector<8x50xf32>,
    return
  }
  func.func @transform_0(%arg0: i32) -> (i32, i32) {
    %c0_i32 = arith.constant 0 : i32
    %c0_i32_0 = arith.constant 0 : i32
    return %arg0, %c0_i32 : i32, i32
  }
  func.func @transform_1(%arg0: i32) -> (i32, i32) {
    %c0_i32 = arith.constant 0 : i32
    %c0_i32_0 = arith.constant 0 : i32
    %c0_i32_1 = arith.constant 0 : i32
    return %c0_i32, %c0_i32_0 : i32, i32
  }
  func.func @transform_2(%arg0: i32) -> (i32, i32) {
    %c0_i32 = arith.constant 0 : i32
    %c0_i32_0 = arith.constant 0 : i32
    %c0_i32_1 = arith.constant 0 : i32
    return %c0_i32, %c0_i32_0 : i32, i32
  }
  func.func @transform_3(%arg0: i32) -> (i32, i32) {
    %c0_i32 = arith.constant 0 : i32
    %c0_i32_0 = arith.constant 0 : i32
    return %arg0, %c0_i32 : i32, i32
  }
}

</mosaic_0001>

<bundles_post_ra>
// kernel: style_classifier_forward.1
= control target key start
LH: loop header
LB: loop body
LE: loop exit
PB: predicated region body
PF: predicated region fallthrough
CT: control target
= control target key end

     0   :  { %8 = vsyncpa [#allocation3], 0  ;;  %s621_s0 = inlined_call_operand.hbm [shape: f32[2,512], index: 0, kind: input, shape index: {}]   ;;  %s622_s1 = inlined_call_operand.hbm [shape: f32[512,128], index: 1, kind: input, shape index: {}]   ;;  %s623_s2 = inlined_call_operand.vmem [shape: f32[1,128], index: 2, kind: input, shape index: {}]   ;;  %s624_s3 = inlined_call_operand.hbm [shape: f32[2,50], index: 3, kind: output, shape index: {}]  }
   0x1   :  { %9 = vsyncpa [#allocation6], 0 }
   0x2   :  { %10 = vsyncpa [#allocation4], 0 }
   0x3   :  { %15 = vsyncadd [#allocation3], 384  ;;  %s554_s12 = smov [#allocation2]   ;;  %s482_s16 = scalar_lea.hbm %s621_s0, 128 }
   0x4   :  { %s16_s13 = sshll.u32 %s554_s12, 4  ;;  %p483_p0 = scmp.ne.s32.totalorder %s621_s0, %s482_s16  ;;  %s17_s13 = int_to_ptr.vmem [resolvable:$true] %s16_s13 }
   0x5   :  { %p486_p1 = scmp.lt.u32.totalorder %s482_s16, %s621_s0 }
   0x7   :  { %p488_p2 = pnand %p486_p1, %p483_p0 }
   0x9   :  { %491 = shalt.err (!%p488_p2)
}
   0xa   :  { %s492_s21 = scalar_lea.vmem %s17_s13, 128  ;;  %s496_s22 = scalar_lea.vmem %s17_s13, 512 }
   0xb   :  { %p493_p3 = scmp.ne.s32.totalorder %s17_s13, %s492_s21  ;;  %p497_p4 = scmp.lt.s32.totalorder %s17_s13, %s17_s13 }
   0xc   :  { %p498_p5 = scmp.lt.s32.totalorder %s496_s22, %s492_s21 }
   0xe   :  { %p499_p6 = por %p498_p5, %p497_p4 }
  0x10   :  { %p500_p7 = pnand %p499_p6, %p493_p3 }
  0x12   :  { %503 = shalt.err (!%p500_p7)
}
  0x13   :  { %s555_s23 = smov 128   ;;  %s556_s24 = smov 8  }
  0x14   :  { %22 = dma.hbm_to_vmem [thread:$0]  %s621_s0, 128, %s17_s13, [#allocation3], %s555_s23, %s555_s23, %s556_s24  }
  0x15   :  { %s557_s27 = smov [#allocation5]   ;;  %s504_s4 = scalar_lea.hbm %s622_s1, 8192 }
  0x16   :  { %s28_s28 = sshll.u32 %s557_s27, 4  ;;  %p505_p8 = scmp.ne.s32.totalorder %s622_s1, %s504_s4  ;;  %s29_s28 = int_to_ptr.vmem [resolvable:$true] %s28_s28 }
  0x17   :  { %p508_p9 = scmp.lt.u32.totalorder %s504_s4, %s622_s1 }
  0x19   :  { %p510_p10 = pnand %p508_p9, %p505_p8 }
  0x1b   :  { %513 = shalt.err (!%p510_p10)
}
  0x1c   :  { %s514_s9 = scalar_lea.vmem %s29_s28, 8192  ;;  %p519_p12 = scmp.lt.s32.totalorder %s29_s28, %s29_s28 }
  0x1d   :  { %p515_p11 = scmp.ne.s32.totalorder %s29_s28, %s514_s9  ;;  %p520_p13 = scmp.lt.s32.totalorder %s514_s9, %s514_s9 }
  0x1f   :  { %p521_p0 = por %p520_p13, %p519_p12 }
  0x21   :  { %p522_p1 = pnand %p521_p0, %p515_p11 }
  0x23   :  { %525 = shalt.err (!%p522_p1)
}
  0x24   :  { %34 = dma.hbm_to_vmem [thread:$0]  %s622_s1, 8192, %s29_s28, [#allocation6], %s555_s23, %s555_s23, %s556_s24  }
  0x25   :  { %548 = dma.done.wait [#allocation3], 512  }
  0x26   :  { %549 = vsyncadd [#allocation3], 4294966784 }
  0x27   :  { %550 = dma.done.wait [#allocation6], 8192  }
  0x28   :  { %551 = vsyncadd [#allocation6], 4294959104  ;;  %v63_v0 = vld [vmem:[#allocation5 + $0x80] sm:$0xff]  ;;  %v64_v1 = vld [vmem:[#allocation5 + $0x88] sm:$0xff]  ;;  %v558_v51 = vmov 1983009808   ;;  %v129_v53 = vlaneseq }
  0x29   :  { %v47_v2 = vld [vmem:[#allocation5] sm:$0xff]  ;;  %v400_v3 = vpack.c.bf16 %v64_v1, %v63_v0  ;;  %v48_v4 = vld [vmem:[#allocation5 + $0x8] sm:$0xff]  ;;  %v65_v11 = vld [vmem:[#allocation5 + $0x90] sm:$0xff]  ;;  %v127_v52 = vunpack.c.l.s4 %v558_v51  ;;  %vm308_vm0 = vcmask 408576  }
  0x2a   :  { %v95_v5 = vld [vmem:[#allocation5 + $0x180] sm:$0xff]  ;;  %v96_v6 = vld [vmem:[#allocation5 + $0x188] sm:$0xff]  ;;  %v402_v7 = vpack.c.bf16 %v48_v4, %v47_v2  ;;  %v66_v13 = vld [vmem:[#allocation5 + $0x98] sm:$0xff] }
  0x2b   :  { %v432_v8 = vpack.c.bf16 %v96_v6, %v95_v5  ;;  %v79_v9 = vld [vmem:[#allocation5 + $0x100] sm:$0xff]  ;;  %v80_v10 = vld [vmem:[#allocation5 + $0x108] sm:$0xff]  ;;  %401 = vmatprep.subr.bf16.mxu0 %v400_v3  ;;  %v49_v14 = vld [vmem:[#allocation5 + $0x10] sm:$0xff]  ;;  %v404_v16 = vpack.c.bf16 %v66_v13, %v65_v11  ;;  %v128_v2 = vunpack.c.0.s8 %v127_v52  ;;  %v130_v3 = vshrl.u32 %v129_v53, 7 }
  0x2c   :  { %v434_v12 = vpack.c.bf16 %v80_v10, %v79_v9  ;;  %v50_v15 = vld [vmem:[#allocation5 + $0x18] sm:$0xff]  ;;  %403 = vmatpush3.bf16.msra.mxu0 %v402_v7  ;;  %v97_v18 = vld [vmem:[#allocation5 + $0x190] sm:$0xff]  ;;  %v67_v23 = vld [vmem:[#allocation5 + $0xa0] sm:$0xff] }
  0x2d   :  { %433 = vmatprep.subr.bf16.mxu1 %v432_v8  ;;  %v406_v17 = vpack.c.bf16 %v50_v15, %v49_v14  ;;  %v98_v19 = vld [vmem:[#allocation5 + $0x198] sm:$0xff]  ;;  %v81_v20 = vld [vmem:[#allocation5 + $0x110] sm:$0xff]  ;;  %v68_v24 = vld [vmem:[#allocation5 + $0xa8] sm:$0xff]  ;;  %405 = vmatprep.subr.bf16.mxu0 %v404_v16 }
  0x2e   :  { %435 = vmatpush3.bf16.msra.mxu1 %v434_v12  ;;  %v436_v21 = vpack.c.bf16 %v98_v19, %v97_v18  ;;  %v82_v22 = vld [vmem:[#allocation5 + $0x118] sm:$0xff]  ;;  %v408_v26 = vpack.c.bf16 %v68_v24, %v67_v23  ;;  %v51_v27 = vld [vmem:[#allocation5 + $0x20] sm:$0xff]  ;;  %v52_v28 = vld [vmem:[#allocation5 + $0x28] sm:$0xff] }
  0x2f   :  { %v438_v25 = vpack.c.bf16 %v82_v22, %v81_v20  ;;  %v99_v29 = vld [vmem:[#allocation5 + $0x1a0] sm:$0xff]  ;;  %v100_v30 = vld [vmem:[#allocation5 + $0x1a8] sm:$0xff]  ;;  %v410_v33 = vpack.c.bf16 %v52_v28, %v51_v27  ;;  %v69_v35 = vld [vmem:[#allocation5 + $0xb0] sm:$0xff]  ;;  %v131_v22 = vsub.s32 %v128_v2, %v130_v3 }
  0x30   :  { %437 = vmatprep.subr.bf16.mxu1 %v436_v21  ;;  %v83_v31 = vld [vmem:[#allocation5 + $0x120] sm:$0xff]  ;;  %v84_v32 = vld [vmem:[#allocation5 + $0x128] sm:$0xff]  ;;  %407 = vmatpush3.bf16.msra.mxu0 %v406_v17  ;;  %v440_v34 = vpack.c.bf16 %v100_v30, %v99_v29  ;;  %v70_v36 = vld [vmem:[#allocation5 + $0xb8] sm:$0xff] }
  0x31   :  { %v53_v37 = vld [vmem:[#allocation5 + $0x30] sm:$0xff]  ;;  %409 = vmatprep.subr.bf16.mxu0 %v408_v26  ;;  %v442_v38 = vpack.c.bf16 %v84_v32, %v83_v31  ;;  %v412_v39 = vpack.c.bf16 %v70_v36, %v69_v35  ;;  %v54_v40 = vld [vmem:[#allocation5 + $0x38] sm:$0xff]  ;;  %v71_v46 = vld [vmem:[#allocation5 + $0xc0] sm:$0xff] }
  0x32   :  { %439 = vmatpush3.bf16.msra.mxu1 %v438_v25  ;;  %v101_v41 = vld [vmem:[#allocation5 + $0x1b0] sm:$0xff]  ;;  %v102_v42 = vld [vmem:[#allocation5 + $0x1b8] sm:$0xff]  ;;  %v72_v47 = vld [vmem:[#allocation5 + $0xc8] sm:$0xff]  ;;  %v414_v48 = vpack.c.bf16 %v54_v40, %v53_v37 }
  0x33   :  { %441 = vmatprep.subr.bf16.mxu1 %v440_v34  ;;  %v444_v43 = vpack.c.bf16 %v102_v42, %v101_v41  ;;  %v85_v44 = vld [vmem:[#allocation5 + $0x130] sm:$0xff]  ;;  %v86_v45 = vld [vmem:[#allocation5 + $0x138] sm:$0xff]  ;;  %v103_v49 = vld [vmem:[#allocation5 + $0x1c0] sm:$0xff]  ;;  %v416_v55 = vpack.c.bf16 %v72_v47, %v71_v46 }
  0x34   :  { %411 = vmatpush3.bf16.msra.mxu0 %v410_v33  ;;  %v104_v50 = vld [vmem:[#allocation5 + $0x1c8] sm:$0xff]  ;;  %v446_v54 = vpack.c.bf16 %v86_v45, %v85_v44  ;;  %v55_v56 = vld [vmem:[#allocation5 + $0x40] sm:$0xff]  ;;  %v73_v61 = vld [vmem:[#allocation5 + $0xd0] sm:$0xff] }
  0x35   :  { %413 = vmatprep.subr.bf16.mxu0 %v412_v39  ;;  %v56_v57 = vld [vmem:[#allocation5 + $0x48] sm:$0xff]  ;;  %v87_v58 = vld [vmem:[#allocation5 + $0x140] sm:$0xff]  ;;  %v448_v59 = vpack.c.bf16 %v104_v50, %v103_v49  ;;  %v74_v62 = vld [vmem:[#allocation5 + $0xd8] sm:$0xff] }
  0x36   :  { %443 = vmatpush3.bf16.msra.mxu1 %v442_v38  ;;  %v88_v60 = vld [vmem:[#allocation5 + $0x148] sm:$0xff]  ;;  %v105_v63 = vld [vmem:[#allocation5 + $0x1d0] sm:$0xff]  ;;  %v106_v0 = vld [vmem:[#allocation5 + $0x1d8] sm:$0xff]  ;;  %v418_v1 = vpack.c.bf16 %v56_v57, %v55_v56  ;;  %v420_v5 = vpack.c.bf16 %v74_v62, %v73_v61 }
  0x37   :  { %445 = vmatprep.subr.bf16.mxu1 %v444_v43  ;;  %v450_v4 = vpack.c.bf16 %v88_v60, %v87_v58  ;;  %v57_v6 = vld [vmem:[#allocation5 + $0x50] sm:$0xff]  ;;  %v58_v7 = vld [vmem:[#allocation5 + $0x58] sm:$0xff]  ;;  %v452_v9 = vpack.c.bf16 %v106_v0, %v105_v63  ;;  %v75_v11 = vld [vmem:[#allocation5 + $0xe0] sm:$0xff] }
  0x38   :  { %415 = vmatpush3.bf16.msra.mxu0 %v414_v48  ;;  %v89_v8 = vld [vmem:[#allocation5 + $0x150] sm:$0xff]  ;;  %v90_v10 = vld [vmem:[#allocation5 + $0x158] sm:$0xff]  ;;  %v76_v12 = vld [vmem:[#allocation5 + $0xe8] sm:$0xff]  ;;  %v422_v18 = vpack.c.bf16 %v58_v7, %v57_v6 }
  0x39   :  { %417 = vmatprep.subr.bf16.mxu0 %v416_v55  ;;  %v59_v13 = vld [vmem:[#allocation5 + $0x60] sm:$0xff]  ;;  %v60_v14 = vld [vmem:[#allocation5 + $0x68] sm:$0xff]  ;;  %v77_v20 = vld [vmem:[#allocation5 + $0xf0] sm:$0xff]  ;;  %v454_v23 = vpack.c.bf16 %v90_v10, %v89_v8  ;;  %v424_v24 = vpack.c.bf16 %v76_v12, %v75_v11 }
  0x3a   :  { %447 = vmatpush3.bf16.msra.mxu1 %v446_v54  ;;  %v107_v15 = vld [vmem:[#allocation5 + $0x1e0] sm:$0xff]  ;;  %v108_v16 = vld [vmem:[#allocation5 + $0x1e8] sm:$0xff]  ;;  %v78_v21 = vld [vmem:[#allocation5 + $0xf8] sm:$0xff]  ;;  %v426_v32 = vpack.c.bf16 %v60_v14, %v59_v13 }
  0x3b   :  { %449 = vmatprep.subr.bf16.mxu1 %v448_v59  ;;  %v91_v17 = vld [vmem:[#allocation5 + $0x160] sm:$0xff]  ;;  %v92_v19 = vld [vmem:[#allocation5 + $0x168] sm:$0xff]  ;;  %v109_v25 = vld [vmem:[#allocation5 + $0x1f0] sm:$0xff]  ;;  %v456_v27 = vpack.c.bf16 %v108_v16, %v107_v15  ;;  %v428_v34 = vpack.c.bf16 %v78_v21, %v77_v20 }
  0x3c   :  { %419 = vmatpush3.bf16.msra.mxu0 %v418_v1  ;;  %v110_v26 = vld [vmem:[#allocation5 + $0x1f8] sm:$0xff]  ;;  %v472_v28 = vld [vmem:[#allocation2] ss:$8 sps:$4 sm:$0xff]   ;;  %v476_v30 = vld [vmem:[#allocation2 + $0x4] ss:$8 sps:$4 sm:$0xff]   ;;  %v458_v33 = vpack.c.bf16 %v92_v19, %v91_v17 }
  0x3d   :  { %421 = vmatprep.subr.bf16.mxu0 %v420_v5  ;;  %v474_v29 = vld [vmem:[#allocation2 + $0x10] ss:$8 sps:$4 sm:$0xff]   ;;  %v477_v31 = vld [vmem:[#allocation2 + $0x14] ss:$8 sps:$4 sm:$0xff]   ;;  %v132_v35 = vrot.slane %v472_v28, %v131_v22  ;;  %v139_v39 = vrot.slane %v476_v30, %v131_v22  ;;  %v460_v41 = vpack.c.bf16 %v110_v26, %v109_v25  ;;  %v328_v51 = vld [vmem:[%s623_s2] ss:$0 sm:$0xff] }
  0x3e   :  { %451 = vmatpush3.bf16.msra.mxu1 %v450_v4  ;;  %v61_v36 = vld [vmem:[#allocation5 + $0x70] sm:$0xff]  ;;  %v62_v37 = vld [vmem:[#allocation5 + $0x78] sm:$0xff]  ;;  %v146_v38 = vrot.slane %v474_v29, %v131_v22  ;;  %v153_v40 = vrot.slane %v477_v31, %v131_v22 }
  0x3f   :  { %453 = vmatprep.subr.bf16.mxu1 %v452_v9  ;;  %v93_v42 = vld [vmem:[#allocation5 + $0x170] sm:$0xff]  ;;  %v94_v43 = vld [vmem:[#allocation5 + $0x178] sm:$0xff]  ;;  %v430_v46 = vpack.c.bf16 %v62_v37, %v61_v36 }
  0x40   :  { %423 = vmatpush3.bf16.msra.mxu0 %v422_v18  ;;  %v155_v44 = vcombine.high %v132_v35, %v146_v38  ;;  %v157_v45 = vcombine.high %v139_v39, %v153_v40  ;;  %v462_v47 = vpack.c.bf16 %v94_v43, %v93_v42  ;;  %v154_v48 = vcombine.low %v132_v35, %v146_v38 }
  0x41   :  { %425 = vmatprep.subr.bf16.mxu0 %v424_v24  ;;  %v156_v49 = vcombine.low %v139_v39, %v153_v40 }
  0x42   :  { %455 = vmatpush3.bf16.msra.mxu1 %v454_v23  ;;  %226 = vmatprep.mubr.f32.mxu0 %v155_v44 }
  0x43   :  { %457 = vmatprep.subr.bf16.mxu1 %v456_v27  ;;  %296 = vmatprep.mubr.f32.mxu1 %v157_v45 }
  0x44   :  { %427 = vmatpush3.bf16.msra.mxu0 %v426_v32 }
  0x45   :  { %429 = vmatprep.subr.bf16.mxu0 %v428_v34 }
  0x46   :  { %459 = vmatpush3.bf16.msra.mxu1 %v458_v33 }
  0x47   :  { %461 = vmatprep.subr.bf16.mxu1 %v460_v41 }
  0x48   :  { %431 = vmatpush3.bf16.msra.mxu0 %v430_v46 }
  0x4a   :  { %463 = vmatpush3.bf16.msra.mxu1 %v462_v47 }
  0x4b   :  { %227 = vmatmul.mubr.f32.vlgmr.msra.gmra.mrb[0].mxu0 %v154_v48 }
  0x4d   :  { %297 = vmatmul.mubr.f32.vlgmr.msra.gmra.mrb[0].mxu1 %v156_v49 }
 0x11e   :  { %v362_v50 = vpop.f32.mrb[0].mxu0 }
 0x11f   :  { %v363_v52 = vpop.f32.mrb[1].mxu0 }
 0x120   :  { %v397_v53 = vpop.f32.mrb[0].mxu1  ;;  %v364_v54 = vadd.f32 %v363_v52, %v362_v50 }
 0x121   :  { %v398_v55 = vpop.f32.mrb[1].mxu1 }
 0x122   :  { %v399_v56 = vadd.f32 %v398_v55, %v397_v53  ;;  %v229_v57 = vadd.f32 %v364_v54, %v328_v51 }
 0x124   :  { %v299_v58 = vadd.f32 %v399_v56, %v229_v57 }
 0x126   :  { %v329_v59 = vmul.f32 -1.442695, %v299_v58 }
 0x128   :  { %478 = vpow2.f32 %v329_v59 }
 0x132   :  { %v479_v60 = vpop.eup %478 }
 0x133   :  { %v305_v61 = vadd.f32 1.0, %v479_v60 }
 0x135   :  { %480 = vrcp.f32 %v305_v61 }
 0x13f   :  { %v481_v62 = vpop.eup %480 }
 0x140   :  { %309 = vst.msk [vmem:[#allocation7] sm:$0xff] %vm308_vm0, %v481_v62 }
 0x141   :  { %314 = vsyncadd [#allocation4], 96  ;;  %s559_s12 = smov [#allocation7]  }
 0x142   :  { %s315_s13 = sshll.u32 %s559_s12, 4  ;;  %s316_s13 = int_to_ptr.vmem [resolvable:$true] %s315_s13 }
 0x143   :  { %s526_s2 = scalar_lea.vmem %s316_s13, 32  ;;  %s530_s14 = scalar_lea.vmem %s316_s13, 128 }
 0x144   :  { %p527_p2 = scmp.ne.s32.totalorder %s316_s13, %s526_s2  ;;  %p531_p3 = scmp.lt.s32.totalorder %s316_s13, %s316_s13 }
 0x145   :  { %p532_p4 = scmp.lt.s32.totalorder %s530_s14, %s526_s2 }
 0x147   :  { %p533_p5 = por %p532_p4, %p531_p3 }
 0x149   :  { %p534_p6 = pnand %p533_p5, %p527_p2 }
 0x14b   :  { %537 = shalt.err (!%p534_p6)
}
 0x14c   :  { %s538_s17 = scalar_lea.hbm %s624_s3, 32 }
 0x14d   :  { %p539_p7 = scmp.ne.s32.totalorder %s624_s3, %s538_s17  ;;  %p542_p8 = scmp.lt.u32.totalorder %s538_s17, %s624_s3 }
 0x14f   :  { %p544_p9 = pnand %p542_p8, %p539_p7 }
 0x151   :  { %547 = shalt.err (!%p544_p9)
}
 0x152   :  { %s560_s22 = smov 32   ;;  %s561_s23 = smov 2  }
 0x153   :  { %321 = dma.vmem_to_hbm [thread:$0]  %s316_s13, 32, %s624_s3, [#allocation4], %s560_s22, %s560_s22, %s561_s23  }
 0x154   :  { %552 = dma.done.wait [#allocation4], 128  }
 0x155   :  { %553 = vsyncadd [#allocation4], 4294967168 }
 0x156   :  { %325 = vsyncpa [#allocation3], 1 }
 0x157   :  { %326 = vsyncpa [#allocation6], 1 }
 0x158   :  { %327 = vsyncpa [#allocation4], 1 }

</bundles_post_ra>
